<compile_context>
chip_gen: v6e
topology: v6e:2x2x1
jax: 0.10.0
libtpu: 0.0.40
codegen_flags: <defaults>
</compile_context>

<pallas_src>
import functools

import jax
import jax.numpy as jnp
from jax import lax
from jax.experimental import pallas as pl
from jax.experimental.pallas import tpu as pltpu


def _vmem_capacity_bytes():
    """Per-core VMEM capacity; conservative 64 MiB (v7x) fallback."""
    try:
        return int(pltpu.get_tpu_info().vmem_capacity_bytes)
    except Exception:  # non-TPU backend / API drift -> conservative default
        return 64 * 1024 * 1024


def _pick_row_tile(rows, group_bytes, weight_bytes, vmem_cap, want_multi_step):
    """Output-row-groups per grid step (multiple of 8).

    Generation aware: the per-step budget scales with physical VMEM
    (~21 MiB on 128 MiB v5e/v6e, ~10 MiB on 64 MiB v7x).  Among feasible
    multiples of 8 the tile minimising wasted rows (nt*tr - rows) wins, so we
    never compute/DMA whole padded row-groups that are sliced away afterwards.
    """
    budget = max(vmem_cap // 6, 2 * 1024 * 1024)
    tr_max = (budget - weight_bytes) // max(group_bytes, 1)
    tr_max = max(8, (tr_max // 8) * 8)
    rows8 = max(8, -(-rows // 8) * 8)
    tr_max = min(tr_max, rows8)
    if want_multi_step and rows8 >= 16:
        # batch==1: keep >=2 grid steps so v7x's second TensorCore has work.
        tr_max = min(tr_max, max(8, ((rows8 // 2) + 7) // 8 * 8))
    best = None
    for tr in range(8, tr_max + 1, 8):
        nt = -(-rows // tr)
        key = (nt * tr - rows, nt)          # least waste, then fewest steps
        if best is None or key < best[0]:
            best = (key, tr, nt)
    _, tr, nt = best
    return int(tr), int(nt)


def _down_kernel(xm_ref, xh_ref, w_ref, b_ref, o_ref, *, tr, wo, c):
    # xm_ref: (1, tr, 2, wq, 2c)  main rows (row-phase split, col-phase merged)
    # xh_ref: (1, 1, 2, wq, 2c)   halo: the even row just below this tile
    # w_ref : (12c, c)            packed taps (bf16), b_ref: (1, c) f32
    # o_ref : (1, tr*wo, c)
    xe = xm_ref[0, :, 0]                                  # (tr, wq, 2c) even rows
    xo = xm_ref[0, :, 1]                                  # (tr, wq, 2c) odd rows
    xh = xh_ref[0, 0, 0]                                  # (wq, 2c)
    # TODO(synk): replace this VMEM concat copy by a small corrective matmul on
    # the last output row so the even-row tile is never duplicated in VMEM.
    xe_ext = jnp.concatenate([xe, xh[None]], axis=0)      # (tr+1, wq, 2c)

    pieces = []
    for kh in range(3):
        src, r0 = (xo, 0) if kh == 1 else (xe_ext, kh // 2)
        for d in range(2):
            pieces.append(src[r0:r0 + tr, d:d + wo, :])   # (tr, wo, 2c)

    # Single K-dense MXU contraction (K = 12*C): the MXU accumulates internally
    # and drains once; no per-tap accumulator read-modify-write passes.
    patches = jnp.concatenate(pieces, axis=-1).reshape(tr * wo, 12 * c)
    acc = jnp.dot(patches, w_ref[...], preferred_element_type=jnp.float32)
    o_ref[0] = (acc + b_ref[...]).astype(o_ref.dtype)


def _up_kernel(xm_ref, xh_ref, w_ref, b_ref, o_ref, *, tr, w, c):
    # xm_ref: (1, tr, wp, c)  rows [i0, i0+tr) of the 1-padded original input
    # xh_ref: (1, 2, wp, c)   rows [i0+tr, i0+tr+2)
    # w_ref : (9c, 4c)        phase-fused taps (bf16), b_ref: (1, 4c) f32
    # o_ref : (1, tr*w, 4c)   lane-packed phases: lane = (2a+b)*c + channel
    # TODO(synk): same halo-concat note as the down kernel.
    x_ext = jnp.concatenate([xm_ref[0], xh_ref[0]], axis=0)   # (tr+2, wp, c)
    pieces = [x_ext[dh:dh + tr, dw:dw + w, :]
              for dh in range(3) for dw in range(3)]          # 9 x (tr, w, c)
    # All four 2x2-phase convs fused into ONE (tr*w, 9c) x (9c, 4c) matmul:
    # one im2col, one MXU drain, one lane-dense (..., 4c) store per step.
    patches = jnp.concatenate(pieces, axis=-1).reshape(tr * w, 9 * c)
    acc = jnp.dot(patches, w_ref[...], preferred_element_type=jnp.float32)
    o_ref[0] = (acc + b_ref[...]).astype(o_ref.dtype)


@functools.partial(jax.jit, static_argnames=("downsample", "compute_dtype"))
def resize_forward(x_nchw, weight_oihw, bias, downsample=1,
                   compute_dtype=jnp.bfloat16):
    """Pallas implementation of Resize.forward. Inputs/outputs are NCHW."""
    n, c, h, w = x_nchw.shape
    out_dtype = x_nchw.dtype
    cdt = jnp.dtype(compute_dtype)
    esz = cdt.itemsize
    vmem_cap = _vmem_capacity_bytes()
    want_multi_step = (n == 1)

    # NCHW -> NHWC + cast; the conv/tiling pad below is emitted right next to
    # this copy so XLA fuses them into one input HBM pass.
    # TODO(synk): move the bottom/right boundary pad fully in-kernel (masked
    # taps on the last row tile) to drop it from the input pass entirely.
    xt = jnp.transpose(x_nchw, (0, 2, 3, 1)).astype(cdt)                  # NHWC
    w_t = jnp.transpose(weight_oihw, (2, 3, 1, 0)).astype(jnp.float32)    # (3,3,Ci,Co)
    b2 = bias.reshape(1, c).astype(jnp.float32)

    if downsample:
        # ---- downsample: pad(0,1,0,1) + 3x3 / stride-2 conv ----
        ho, wo = (h - 2) // 2 + 1, (w - 2) // 2 + 1
        wq = wo + 1
        # Per-row-group working set: double-buffered in/out blocks + in-kernel
        # xe_ext copy, im2col patches and f32 accumulator.
        group_bytes = (esz * (2 * (4 * wq * c) + 2 * wo * c
                              + 4 * wq * c + 12 * wo * c) + 4 * wo * c)
        weight_bytes = 2 * esz * 12 * c * c + 8 * c
        tr, nt = _pick_row_tile(ho, group_bytes, weight_bytes, vmem_cap,
                                want_multi_step)
        hq = tr * nt + 1
        # One pad covers the conv's bottom/right zero pad plus tile rounding;
        # zeros past row H / col W are either the conv pad or hit the zero
        # kw=3 tap.
        xp = jnp.pad(xt, ((0, 0), (0, 2 * hq - h), (0, 2 * wq - w), (0, 0)))
        # Free reshape: rows -> (hq, 2) row-phase pair, cols -> (wq, 2*C).
        xr = xp.reshape(n, hq, 2, wq, 2 * c)

        # Pack taps for a single K = 12*C contraction:
        # K index = (kh*4 + kw')*C + cin with kw' in {0,1,2,3}, kw'=3 zeroed.
        w_down = jnp.pad(w_t, ((0, 0), (0, 1), (0, 0), (0, 0)))
        w_down = w_down.reshape(12 * c, c).astype(cdt)

        step_bytes = weight_bytes + tr * group_bytes
        cparams = pltpu.CompilerParams(
            dimension_semantics=("parallel", "parallel"),
            vmem_limit_bytes=int(min(vmem_cap * 3 // 4,
                                     max(4 * step_bytes, 32 << 20))))

        kernel = functools.partial(_down_kernel, tr=tr, wo=wo, c=c)
        out = pl.pallas_call(
            kernel,
            out_shape=jax.ShapeDtypeStruct((n, nt * tr * wo, c), cdt),
            grid_spec=pltpu.PrefetchScalarGridSpec(
                num_scalar_prefetch=0,
                grid=(n, nt),
                in_specs=[
                    pl.BlockSpec((1, tr, 2, wq, 2 * c),
                                 lambda b, r: (b, r, 0, 0, 0)),
                    pl.BlockSpec((1, 1, 2, wq, 2 * c),
                                 lambda b, r: (b, (r + 1) * tr, 0, 0, 0)),
                    # TODO(synk): pipeline_mode=pl.Buffered(1) on the two
                    # constant blocks below to stop double-buffering them.
                    pl.BlockSpec((12 * c, c), lambda b, r: (0, 0)),
                    pl.BlockSpec((1, c), lambda b, r: (0, 0)),
                ],
                out_specs=pl.BlockSpec((1, tr * wo, c), lambda b, r: (b, r, 0)),
            ),
            compiler_params=cparams,
        )(xr, xr, w_down, b2)
        # Cast back + NHWC->NCHW in one post-kernel pass.  (For production C
        # that is a multiple of 128 the (..., C) store above is unmasked.)
        y = out.reshape(n, nt * tr, wo, c)[:, :ho]
        return jnp.transpose(y, (0, 3, 1, 2)).astype(out_dtype)

    # ---- upsample: nearest 2x + 3x3/s1/pad-1 conv, refolded so the 4x
    # upsampled activation is never materialised; the four output 2x2 phases
    # are fused into one (.., 9C) x (9C, 4C) matmul per step. ----
    wp = w + 2
    group_bytes = (esz * (2 * wp * c + wp * c + 2 * 4 * w * c + 9 * w * c)
                   + 4 * 4 * w * c)
    weight_bytes = 2 * esz * 9 * c * 4 * c + 16 * c
    tr, nt = _pick_row_tile(h, group_bytes, weight_bytes, vmem_cap,
                            want_multi_step)
    assert tr % 2 == 0  # halo index_map below assumes an even row tile
    rows = tr * nt + 2
    xp = jnp.pad(xt, ((0, 0), (1, rows - h - 1), (1, 1), (0, 0)))

    # Fold nearest-2x + pad-1 + 3x3 taps into per-(phase, tap) weights.
    # m3[a, dh, kh]: which kh taps hit padded-input row i0+dh for output row
    # 2*i0+a (identical along W).
    m3 = jnp.array([[[1., 0., 0.], [0., 1., 1.], [0., 0., 0.]],
                    [[0., 0., 0.], [1., 1., 0.], [0., 0., 1.]]], jnp.float32)
    w_up = jnp.einsum('axh,byk,hkio->xyiabo', m3, m3, w_t)
    w_up = w_up.reshape(9 * c, 4 * c).astype(cdt)
    b4 = jnp.tile(b2, (1, 4))                                    # (1, 4c) f32

    step_bytes = weight_bytes + tr * group_bytes
    cparams = pltpu.CompilerParams(
        dimension_semantics=("parallel", "parallel"),
        vmem_limit_bytes=int(min(vmem_cap * 3 // 4,
                                 max(4 * step_bytes, 32 << 20))))

    kernel = functools.partial(_up_kernel, tr=tr, w=w, c=c)
    out = pl.pallas_call(
        kernel,
        out_shape=jax.ShapeDtypeStruct((n, nt * tr * w, 4 * c), cdt),
        grid_spec=pltpu.PrefetchScalarGridSpec(
            num_scalar_prefetch=0,
            grid=(n, nt),
            in_specs=[
                pl.BlockSpec((1, tr, wp, c), lambda b, r: (b, r, 0, 0)),
                pl.BlockSpec((1, 2, wp, c),
                             lambda b, r: (b, (r + 1) * tr // 2, 0, 0)),
                # TODO(synk): pipeline_mode=pl.Buffered(1) on the constant
                # weight/bias blocks.
                pl.BlockSpec((9 * c, 4 * c), lambda b, r: (0, 0)),
                pl.BlockSpec((1, 4 * c), lambda b, r: (0, 0)),
            ],
            out_specs=pl.BlockSpec((1, tr * w, 4 * c), lambda b, r: (b, r, 0)),
        ),
        compiler_params=cparams,
    )(xp, xp, w_up, b4)
    # Untangle the lane-packed phases inside the mandatory NHWC->NCHW
    # transpose + cast (single post-kernel copy of a half-size bf16 slab).
    y = out.reshape(n, nt * tr, w, 2, 2, c)                  # (n, i, j, a, b, c)
    y = jnp.transpose(y, (0, 5, 1, 3, 2, 4)).reshape(n, c, 2 * nt * tr, 2 * w)
    return y[:, :, :2 * h, :].astype(out_dtype)


def resize_ref(x, weight, bias, downsample=1):
    """Pure-JAX f32 reference matching the PyTorch module."""
    if downsample:
        xp = jnp.pad(x, ((0, 0), (0, 0), (0, 1), (0, 1)))
        y = lax.conv_general_dilated(
            xp, weight, (2, 2), 'VALID',
            dimension_numbers=('NCHW', 'OIHW', 'NCHW'))
    else:
        xu = jnp.repeat(jnp.repeat(x, 2, axis=2), 2, axis=3)
        y = lax.conv_general_dilated(
            xu, weight, (1, 1), ((1, 1), (1, 1)),
            dimension_numbers=('NCHW', 'OIHW', 'NCHW'))
    return y + bias[None, :, None, None]


if __name__ == "__main__":
    key = jax.random.PRNGKey(0)
    k1, k2, k3, k4 = jax.random.split(key, 4)
    dim = 4

    # Deterministic synthetic init of nn.Conv2d(dim, dim, 3) parameters.
    fan_in = dim * 3 * 3
    bound = 1.0 / (fan_in ** 0.5)
    weight = jax.random.uniform(k1, (dim, dim, 3, 3), jnp.float32, -bound, bound)
    bias = jax.random.uniform(k2, (dim,), jnp.float32, -bound, bound)

    x_down = jax.random.normal(k3, (2, dim, 16, 16), jnp.float32)
    x_up = jax.random.normal(k4, (2, dim, 8, 8), jnp.float32)
    ref_down = resize_ref(x_down, weight, bias, downsample=1)
    ref_up = resize_ref(x_up, weight, bias, downsample=0)

    # f32 compute path: exact reference numerics.
    y_down = jax.block_until_ready(
        resize_forward(x_down, weight, bias, downsample=1,
                       compute_dtype=jnp.float32))
    assert y_down.shape == (2, dim, 8, 8), y_down.shape
    assert jnp.allclose(y_down, ref_down, atol=1e-4, rtol=1e-4)

    y_up = jax.block_until_ready(
        resize_forward(x_up, weight, bias, downsample=0,
                       compute_dtype=jnp.float32))
    assert y_up.shape == (2, dim, 16, 16), y_up.shape
    assert jnp.allclose(y_up, ref_up, atol=1e-4, rtol=1e-4)

    # Default bf16 compute path (perf config): relaxed tolerance vs f32 ref.
    y_down_bf = jax.block_until_ready(
        resize_forward(x_down, weight, bias, downsample=1))
    assert y_down_bf.shape == (2, dim, 8, 8), y_down_bf.shape
    assert jnp.allclose(y_down_bf, ref_down, atol=5e-2, rtol=5e-2)

    y_up_bf = jax.block_until_ready(
        resize_forward(x_up, weight, bias, downsample=0))
    assert y_up_bf.shape == (2, dim, 16, 16), y_up_bf.shape
    assert jnp.allclose(y_up_bf, ref_up, atol=5e-2, rtol=5e-2)

    print("KERNEL_OK")
</pallas_src>

<mosaic_0001>
module attributes {stable_mosaic.version = 11 : i64} {
  func.func @_down_kernel(%arg0: i32, %arg1: i32, %arg2: memref<1x8x2x9x8xf32, #tpu.memory_space<vmem>>, %arg3: memref<1x1x2x9x8xf32, #tpu.memory_space<vmem>>, %arg4: memref<48x4xf32, #tpu.memory_space<vmem>>, %arg5: memref<1x4xf32, #tpu.memory_space<vmem>>, %arg6: memref<1x64x4xf32, #tpu.memory_space<vmem>>) attributes {dimension_semantics = [#tpu.dimension_semantics<parallel>, #tpu.dimension_semantics<parallel>], iteration_bounds = array<i64: 2, 1>, scalar_prefetch = 0 : i64, scratch_operands = 0 : i64, tpu.core_type = #tpu.core_type<tc>, window_params = [{transform_indices = @transform_0, window_bounds = array<i64: 1, 8, 2, 9, 8>}, {transform_indices = @transform_1, window_bounds = array<i64: 1, 1, 2, 9, 8>}, {pipeline_mode = #tpu.pipeline_mode<synchronous>, transform_indices = @transform_2, window_bounds = array<i64: 48, 4>}, {pipeline_mode = #tpu.pipeline_mode<synchronous>, transform_indices = @transform_3, window_bounds = array<i64: 1, 4>}, {transform_indices = @transform_4, window_bounds = array<i64: 1, 64, 4>}]} {
    %c0 = arith.constant 0 : index
    %c0_0 = arith.constant 0 : index
    %c0_1 = arith.constant 0 : index
    %c0_2 = arith.constant 0 : index
    %c0_3 = arith.constant 0 : index
    %0 = vector.load %arg2[%c0, %c0_0, %c0_1, %c0_2, %c0_3] : memref<1x8x2x9x8xf32, #tpu.memory_space<vmem>>, vector<1x8x1x9x8xf32>
    %1 = vector.shape_cast %0 : vector<1x8x1x9x8xf32> to vector<8x9x8xf32>
    %c0_4 = arith.constant 0 : index
    %c0_5 = arith.constant 0 : index
    %c1 = arith.constant 1 : index
    %c0_6 = arith.constant 0 : index
    %c0_7 = arith.constant 0 : index
    %2 = vector.load %arg2[%c0_4, %c0_5, %c1, %c0_6, %c0_7] : memref<1x8x2x9x8xf32, #tpu.memory_space<vmem>>, vector<1x8x1x9x8xf32>
    %3 = vector.shape_cast %2 : vector<1x8x1x9x8xf32> to vector<8x9x8xf32>
    %c0_8 = arith.constant 0 : index
    %c0_9 = arith.constant 0 : index
    %c0_10 = arith.constant 0 : index
    %c0_11 = arith.constant 0 : index
    %c0_12 = arith.constant 0 : index
    %4 = vector.load %arg3[%c0_8, %c0_9, %c0_10, %c0_11, %c0_12] : memref<1x1x2x9x8xf32, #tpu.memory_space<vmem>>, vector<1x1x1x9x8xf32>
    %5 = vector.shape_cast %4 : vector<1x1x1x9x8xf32> to vector<9x8xf32>
    %6 = vector.shape_cast %5 : vector<9x8xf32> to vector<1x9x8xf32>
    %7 = tpu.concatenate %1, %6 in 0 : vector<8x9x8xf32>, vector<1x9x8xf32> -> vector<9x9x8xf32>
    %8 = vector.extract_strided_slice %7 {offsets = [0, 0, 0], sizes = [8, 8, 8], strides = [1, 1, 1]} : vector<9x9x8xf32> to vector<8x8x8xf32>
    %9 = vector.extract_strided_slice %7 {offsets = [0, 1, 0], sizes = [8, 8, 8], strides = [1, 1, 1]} : vector<9x9x8xf32> to vector<8x8x8xf32>
    %10 = vector.extract_strided_slice %3 {offsets = [0, 0, 0], sizes = [8, 8, 8], strides = [1, 1, 1]} : vector<8x9x8xf32> to vector<8x8x8xf32>
    %11 = vector.extract_strided_slice %3 {offsets = [0, 1, 0], sizes = [8, 8, 8], strides = [1, 1, 1]} : vector<8x9x8xf32> to vector<8x8x8xf32>
    %12 = vector.extract_strided_slice %7 {offsets = [1, 0, 0], sizes = [8, 8, 8], strides = [1, 1, 1]} : vector<9x9x8xf32> to vector<8x8x8xf32>
    %13 = vector.extract_strided_slice %7 {offsets = [1, 1, 0], sizes = [8, 8, 8], strides = [1, 1, 1]} : vector<9x9x8xf32> to vector<8x8x8xf32>
    %14 = tpu.concatenate %8, %9, %10, %11, %12, %13 in 2 : vector<8x8x8xf32>, vector<8x8x8xf32>, vector<8x8x8xf32>, vector<8x8x8xf32>, vector<8x8x8xf32>, vector<8x8x8xf32> -> vector<8x8x48xf32>
    %15 = vector.shape_cast %14 : vector<8x8x48xf32> to vector<64x48xf32>
    %c0_13 = arith.constant 0 : index
    %c0_14 = arith.constant 0 : index
    %16 = vector.load %arg4[%c0_13, %c0_14] : memref<48x4xf32, #tpu.memory_space<vmem>>, vector<48x4xf32>
    %cst = arith.constant dense<0.000000e+00> : vector<64x4xf32>
    %17 = tpu.matmul %15, %16, %cst {dimension_numbers = #tpu.dot_dimension_numbers<[1], [0], [0], [1], [0, 0, 1, 1], [], []>} : vector<64x48xf32>, vector<48x4xf32>, vector<64x4xf32> -> vector<64x4xf32>
    %c0_15 = arith.constant 0 : index
    %c0_16 = arith.constant 0 : index
    %18 = vector.load %arg5[%c0_15, %c0_16] : memref<1x4xf32, #tpu.memory_space<vmem>>, vector<1x4xf32>
    %19 = vector.broadcast %18 : vector<1x4xf32> to vector<64x4xf32>
    %20 = arith.addf %17, %19 : vector<64x4xf32>
    %c0_17 = arith.constant 0 : index
    %c0_18 = arith.constant 0 : index
    %c0_19 = arith.constant 0 : index
    %21 = vector.load %arg6[%c0_17, %c0_18, %c0_19] : memref<1x64x4xf32, #tpu.memory_space<vmem>>, vector<1x64x4xf32>
    %22 = vector.shape_cast %21 : vector<1x64x4xf32> to vector<64x4xf32>
    %23 = vector.shape_cast %20 : vector<64x4xf32> to vector<1x64x4xf32>
    tpu.vector_store %arg6[%c0_17, %c0_18, %c0_19], %23 {strides = array<i32>} : memref<1x64x4xf32, #tpu.memory_space<vmem>>, vector<1x64x4xf32>,
    return
  }
  func.func @transform_0(%arg0: i32, %arg1: i32) -> (i32, i32, i32, i32, i32) {
    %c0_i32 = arith.constant 0 : i32
    %c0_i32_0 = arith.constant 0 : i32
    %c0_i32_1 = arith.constant 0 : i32
    %c0_i32_2 = arith.constant 0 : i32
    return %arg0, %arg1, %c0_i32, %c0_i32_0, %c0_i32_1 : i32, i32, i32, i32, i32
  }
  func.func @transform_1(%arg0: i32, %arg1: i32) -> (i32, i32, i32, i32, i32) {
    %c1_i32 = arith.constant 1 : i32
    %0 = arith.addi %arg1, %c1_i32 : i32
    %c8_i32 = arith.constant 8 : i32
    %1 = arith.muli %0, %c8_i32 : i32
    %c0_i32 = arith.constant 0 : i32
    %c0_i32_0 = arith.constant 0 : i32
    %c0_i32_1 = arith.constant 0 : i32
    %c0_i32_2 = arith.constant 0 : i32
    return %arg0, %1, %c0_i32, %c0_i32_0, %c0_i32_1 : i32, i32, i32, i32, i32
  }
  func.func @transform_2(%arg0: i32, %arg1: i32) -> (i32, i32) {
    %c0_i32 = arith.constant 0 : i32
    %c0_i32_0 = arith.constant 0 : i32
    %c0_i32_1 = arith.constant 0 : i32
    return %c0_i32, %c0_i32_0 : i32, i32
  }
  func.func @transform_3(%arg0: i32, %arg1: i32) -> (i32, i32) {
    %c0_i32 = arith.constant 0 : i32
    %c0_i32_0 = arith.constant 0 : i32
    %c0_i32_1 = arith.constant 0 : i32
    return %c0_i32, %c0_i32_0 : i32, i32
  }
  func.func @transform_4(%arg0: i32, %arg1: i32) -> (i32, i32, i32) {
    %c0_i32 = arith.constant 0 : i32
    %c0_i32_0 = arith.constant 0 : i32
    return %arg0, %arg1, %c0_i32 : i32, i32, i32
  }
}

</mosaic_0001>

<bundles_post_ra>
// kernel: resize_forward.1
= control target key start
LH: loop header
LB: loop body
LE: loop exit
PB: predicated region body
PF: predicated region fallthrough
CT: control target
= control target key end

     0   :  { %s1042_s15 = smov 0   ;;  %s1044_s16 = smov 0   ;;  %s1312_s0 = inlined_call_operand.vmem [shape: f32[2,9,2,9,8], index: 0, kind: input, shape index: {}, may-alias: {0,1}]   ;;  %s1313_s1 = inlined_call_operand.vmem [shape: f32[2,9,2,9,8], index: 1, kind: input, shape index: {}, may-alias: {0,1}]   ;;  %s1314_s2 = inlined_call_operand.vmem [shape: f32[48,4], index: 2, kind: input, shape index: {}]   ;;  %s1315_s3 = inlined_call_operand.vmem [shape: f32[1,4], index: 3, kind: input, shape index: {}]   ;;  %s1316_s4 = inlined_call_operand.vmem [shape: f32[2,64,4], index: 4, kind: output, shape index: {}]  }
   0x1   :  { %s1046_s17 = smov 0  }
   0x2 LB: > { %s26_s18 = sadd.s32 1, %s1006_s16  ;;  %p871_p0 = scmp.ge.s32.totalorder %s1010_s17, 1  ;;  %s1010_s17 = sphi %s1046_s17, %s14_s17   ;;  %s1006_s16 = sphi %s1044_s16, %s1318_s16   ;;  %s1002_s15 = sphi %s1042_s15, %s1317_s15  }
   0x3   : > { %p28_p1 = scmp.ge.s32.totalorder %s26_s18, 2  ;;  %p220_p2 = scmp.lt.s32.totalorder %s1010_s17, 3 }
   0x5   : > { %s1320_s18 = smov (%p28_p1, %s26_s18), 0  ;;  %p221_p3 = pnand %p871_p0, %p220_p2 }
   0x6   : > { %p279_p4 = scmp.lt.s32.totalorder (!%p221_p3), %s1002_s15, 1  ;;  %s1012_s23 = smov (!%p221_p3), 16  }
   0x7   : > { %224 = sbr.rel (%p221_p3) target bundleno = 408 (0x198), region = 36  ;;  %s1013_s24 = smov (!%p221_p3), 8  }
   0x8   : > { %s1014_s29 = smov (!%p221_p3), 24   ;;  %s1015_s6 = smov (!%p221_p3), 32  }
   0x9   : > { %s1016_s21 = smov (!%p221_p3), 40  }
   0xc   : > { %s1322_s15 = smov (!%p279_p4, %s1002_s15), 1  ;;  %vm369_vm0 = vcmask 1046528   ;;  %v609_v53 = vld [vmem:[%s1314_s2 + $0x28] sm:$0xff]  ;;  %v608_v55 = vld [vmem:[%s1314_s2 + $0x20] sm:$0xff]  ;;  %v607_v57 = vld [vmem:[%s1314_s2 + $0x18] sm:$0xff]  ;;  %vm559_vm1 = vcmask 64512  }
   0xd   : > { %s956_s19 = smul.u32 288, %s1322_s15  ;;  %920 = vmatprep.subr.mxu0 %v609_v53  ;;  %944 = vmatprep.subr.mxu1 %v609_v53  ;;  %v606_v58 = vld [vmem:[%s1314_s2 + $0x10] sm:$0xff]  ;;  %v605_v63 = vld [vmem:[%s1314_s2 + $0x8] sm:$0xff]  ;;  %vm568_vm2 = vcmask 130048   ;;  %vm577_vm3 = vcmask 195584   ;;  %vm586_vm4 = vcmask 261120  }
   0xe   : > { %921 = vmatpush3.msra.mxu0 %v609_v53  ;;  %950 = vmatpush3.msra.mxu1 %v609_v53  ;;  %vm595_vm5 = vcmask 326656   ;;  %vm617_vm6 = vcmask 392192   ;;  %vm747_vm7 = vcmask 31744  }
   0xf   : > { %s1068_s22 = scalar_lea.vmem %s1312_s0, %s956_s19  ;;  %s904_s25 = sadd.s32 256, %s956_s19  ;;  %922 = vmatprep.subr.mxu0 %v608_v55  ;;  %945 = vmatprep.subr.mxu1 %v608_v55 }
  0x10   : > { %v884_v0 = vld [vmem:[%s1068_s22 + $0x90] sm:$0xff]  ;;  %v1073_v2 = vld [vmem:[%s1068_s22 + $0x20] sm:$0xff]  ;;  %v321_v3 = vld [vmem:[%s1068_s22 + $0x28] sm:$0x1]  ;;  %s305_s28 = scalar_lea.vmem %s1313_s1, %s904_s25  ;;  %923 = vmatpush3.msra.mxu0 %v608_v55  ;;  %951 = vmatpush3.msra.mxu1 %v608_v55 }
  0x11   : > { %v876_v1 = vld [vmem:[%s1068_s22 + $0x10] sm:$0xff]  ;;  %434 = vrot.lane.b32.xlu1 %v884_v0, %s1012_s23  ;;  %v373_v4 = vrot.slane %v1073_v2, 1  ;;  %v1080_v5 = vld [vmem:[%s1068_s22] sm:$0xff]  ;;  %v374_v6 = vrot.slane %v321_v3, 1  ;;  %v319_v7 = vld [vmem:[%s1068_s22 + $0x8] sm:$0x1]  ;;  %924 = vmatprep.subr.mxu0 %v607_v57 }
  0x12   : > { %426 = vrot.lane.b32.xlu0 %v876_v1, %s1012_s23  ;;  %v370_v8 = vrot.slane %v1080_v5, 1  ;;  %v1085_v9 = vld [vmem:[%s1068_s22 + $0xa0] sm:$0xff]  ;;  %v371_v11 = vrot.slane %v319_v7, 1  ;;  %v329_v12 = vld [vmem:[%s1068_s22 + $0xa8] sm:$0x1]  ;;  %v470_v24 = vrot.slane %v884_v0, 1  ;;  %946 = vmatprep.subr.mxu1 %v607_v57 }
  0x13   : > { %v1088_v10 = vld [vmem:[%s1068_s22 + $0x80] sm:$0xff]  ;;  %v385_v13 = vrot.slane %v1085_v9, 1  ;;  %v327_v14 = vld [vmem:[%s1068_s22 + $0x88] sm:$0x1]  ;;  %v1094_v15 = vsel %vm369_vm0, %v373_v4, %v374_v6  ;;  %v386_v16 = vrot.slane %v329_v12, 1  ;;  %v886_v25 = vld [vmem:[%s1068_s22 + $0xb0] sm:$0xff]  ;;  %925 = vmatpush3.msra.mxu0 %v607_v57  ;;  %952 = vmatpush3.msra.mxu1 %v607_v57 }
  0x14   : > { %v382_v17 = vrot.slane %v1088_v10, 1  ;;  %v383_v18 = vrot.slane %v327_v14, 1  ;;  %v372_v19 = vsel %vm369_vm0, %v370_v8, %v371_v11  ;;  %v885_v22 = vld [vmem:[%s1068_s22 + $0x98] sm:$0x1]  ;;  %v458_v27 = vrot.slane %v876_v1, 1  ;;  %v878_v28 = vld [vmem:[%s1068_s22 + $0x30] sm:$0xff]  ;;  %926 = vmatprep.subr.mxu0 %v606_v58  ;;  %947 = vmatprep.subr.mxu1 %v606_v58 }
  0x15   : > { %396 = vrot.lane.b32.xlu1 %v1094_v15, %s1013_s24  ;;  %v1102_v20 = vsel %vm369_vm0, %v385_v13, %v386_v16  ;;  %v877_v23 = vld [vmem:[%s1068_s22 + $0x18] sm:$0x1]  ;;  %v471_v26 = vrot.slane %v885_v22, 1  ;;  %v1123_v32 = vld [vmem:[%s305_s28] sm:$0xff]  ;;  %v473_v33 = vrot.slane %v886_v25, 1  ;;  %v461_v38 = vrot.slane %v878_v28, 1  ;;  %927 = vmatpush3.msra.mxu0 %v606_v58 }
  0x16   : > { %394 = vrot.lane.b32.xlu0 %v372_v19, %s1013_s24  ;;  %v1105_v21 = vsel %vm369_vm0, %v382_v17, %v383_v18  ;;  %v459_v29 = vrot.slane %v877_v23, 1  ;;  %v887_v30 = vld [vmem:[%s1068_s22 + $0xb8] sm:$0x1]  ;;  %v352_v36 = vld [vmem:[%s305_s28 + $0x8] sm:$0x1]  ;;  %v532_v37 = vrot.slane %v1123_v32, 1  ;;  %953 = vmatpush3.msra.mxu1 %v606_v58 }
  0x17   : > { %v879_v31 = vld [vmem:[%s1068_s22 + $0x38] sm:$0x1]  ;;  %v472_v34 = vsel %vm369_vm0, %v470_v24, %v471_v26  ;;  %v474_v35 = vrot.slane %v887_v30, 1  ;;  %v533_v41 = vrot.slane %v352_v36, 1  ;;  %v1137_v45 = vld [vmem:[%s1068_s22 + $0xc0] sm:$0xff]  ;;  %928 = vmatprep.subr.mxu0 %v605_v63  ;;  %948 = vmatprep.subr.mxu1 %v605_v63  ;;  %v888_v11 = vld [vmem:[%s1068_s22 + $0xd0] sm:$0xff] }
  0x18   : > { %v460_v39 = vsel %vm369_vm0, %v458_v27, %v459_v29  ;;  %v462_v40 = vrot.slane %v879_v31, 1  ;;  %v331_v46 = vld [vmem:[%s1068_s22 + $0xc8] sm:$0x1]  ;;  %v1141_v47 = vld [vmem:[%s1068_s22 + $0x40] sm:$0xff]  ;;  %v388_v49 = vrot.slane %v1137_v45, 1  ;;  %929 = vmatpush3.msra.mxu0 %v605_v63  ;;  %954 = vmatpush3.msra.mxu1 %v605_v63  ;;  %v880_v12 = vld [vmem:[%s1068_s22 + $0x50] sm:$0xff] }
  0x19   : > { %404 = vrot.lane.b32.xlu1 %v1102_v20, %s1013_s24  ;;  %v1131_v42 = vsel %vm369_vm0, %v532_v37, %v533_v41  ;;  %v475_v43 = vsel %vm369_vm0, %v473_v33, %v474_v35  ;;  %v323_v48 = vld [vmem:[%s1068_s22 + $0x48] sm:$0x1]  ;;  %v389_v50 = vrot.slane %v331_v46, 1  ;;  %v376_v51 = vrot.slane %v1141_v47, 1  ;;  %v1169_v59 = vld [vmem:[%s1068_s22 + $0xe0] sm:$0xff]  ;;  %v890_v16 = vld [vmem:[%s1068_s22 + $0xf0] sm:$0xff] }
  0x1a   : > { %402 = vrot.lane.b32.xlu0 %v1105_v21, %s1013_s24  ;;  %v463_v44 = vsel %vm369_vm0, %v461_v38, %v462_v40  ;;  %v377_v52 = vrot.slane %v323_v48, 1  ;;  %v333_v60 = vld [vmem:[%s1068_s22 + $0xe8] sm:$0x1]  ;;  %v1173_v61 = vld [vmem:[%s1068_s22 + $0x60] sm:$0xff]  ;;  %v391_v0 = vrot.slane %v1169_v59, 1  ;;  %v464_v18 = vrot.slane %v880_v12, 1 }
  0x1b   : > { %v390_v54 = vsel %vm369_vm0, %v388_v49, %v389_v50  ;;  %v325_v62 = vld [vmem:[%s1068_s22 + $0x68] sm:$0x1]  ;;  %v392_v1 = vrot.slane %v333_v60, 1  ;;  %v379_v3 = vrot.slane %v1173_v61, 1  ;;  %v604_v6 = vld [vmem:[%s1314_s2] sm:$0xff]  ;;  %v882_v19 = vld [vmem:[%s1068_s22 + $0x70] sm:$0xff] }
  0x1c   : > { %v378_v56 = vsel %vm369_vm0, %v376_v51, %v377_v52  ;;  %v380_v4 = vrot.slane %v325_v62, 1  ;;  %930 = vmatprep.subr.mxu0 %v604_v6  ;;  %949 = vmatprep.subr.mxu1 %v604_v6  ;;  %v889_v13 = vld [vmem:[%s1068_s22 + $0xd8] sm:$0x1]  ;;  %v479_v24 = vrot.slane %v890_v16, 1  ;;  %v467_v27 = vrot.slane %v882_v19, 1 }
  0x1d   : > { %436 = vrot.lane.b32.xlu1 %v886_v25, %s1012_s23  ;;  %v393_v7 = vsel %vm369_vm0, %v391_v0, %v392_v1  ;;  %931 = vmatpush3.msra.mxu0 %v604_v6  ;;  %v881_v14 = vld [vmem:[%s1068_s22 + $0x58] sm:$0x1]  ;;  %v477_v17 = vrot.slane %v889_v13, 1 }
  0x1e   : > { %428 = vrot.lane.b32.xlu0 %v878_v28, %s1012_s23  ;;  %v381_v8 = vsel %vm369_vm0, %v379_v3, %v380_v4  ;;  %955 = vmatpush3.msra.mxu1 %v604_v6  ;;  %v891_v22 = vld [vmem:[%s1068_s22 + $0xf8] sm:$0x1] }
  0x1f   : > { %v883_v23 = vld [vmem:[%s1068_s22 + $0x78] sm:$0x1]  ;;  %v480_v26 = vrot.slane %v891_v22, 1  ;;  %s905_s22 = sshll.u32 %s1322_s15, 6 }
  0x20   : > { %v468_v29 = vrot.slane %v883_v23, 1  ;;  %s316_s27 = scalar_lea.vmem %s1316_s4, %s905_s22 }
  0x21   : > { %490 = vrot.lane.b32.xlu1 %v472_v34, %s1014_s29  ;;  %v481_v30 = vsel %vm369_vm0, %v479_v24, %v480_v26 }
  0x22   : > { %482 = vrot.lane.b32.xlu0 %v460_v39, %s1014_s29  ;;  %v469_v31 = vsel %vm369_vm0, %v467_v27, %v468_v29 }
  0x25   : > { %492 = vrot.lane.b32.xlu1 %v475_v43, %s1014_s29 }
  0x26   : > { %484 = vrot.lane.b32.xlu0 %v463_v44, %s1014_s29 }
  0x29   : > { %515 = vrot.lane.b32.xlu1 %v1085_v9, %s1015_s6 }
  0x2a   : > { %507 = vrot.lane.b32.xlu0 %v1073_v2, %s1015_s6 }
  0x2d   : > { %406 = vrot.lane.b32.xlu1 %v390_v54, %s1013_s24 }
  0x2e   : > { %398 = vrot.lane.b32.xlu0 %v378_v56, %s1013_s24 }
  0x31   : > { %517 = vrot.lane.b32.xlu1 %v1137_v45, %s1015_s6 }
  0x32   : > { %509 = vrot.lane.b32.xlu0 %v1141_v47, %s1015_s6 }
  0x35   : > { %543 = vrot.lane.b32.xlu1 %v1102_v20, %s1016_s21  ;;  %v465_v20 = vrot.slane %v881_v14, 1 }
  0x36   : > { %535 = vrot.lane.b32.xlu0 %v1094_v15, %s1016_s21  ;;  %v476_v15 = vrot.slane %v888_v11, 1 }
  0x37   : > { %v466_v28 = vsel %vm369_vm0, %v464_v18, %v465_v20 }
  0x38   : > { %v478_v25 = vsel %vm369_vm0, %v476_v15, %v477_v17 }
  0x39   : > { %408 = vrot.lane.b32.xlu1 %v393_v7, %s1013_s24 }
  0x3a   : > { %400 = vrot.lane.b32.xlu0 %v381_v8, %s1013_s24 }
  0x3d   : > { %438 = vrot.lane.b32.xlu1 %v888_v11, %s1012_s23 }
  0x3e   : > { %430 = vrot.lane.b32.xlu0 %v880_v12, %s1012_s23 }
  0x41   : > { %545 = vrot.lane.b32.xlu1 %v390_v54, %s1016_s21 }
  0x42   : > { %537 = vrot.lane.b32.xlu0 %v378_v56, %s1016_s21 }
  0x45   : > { %440 = vrot.lane.b32.xlu1 %v890_v16, %s1012_s23 }
  0x46   : > { %432 = vrot.lane.b32.xlu0 %v882_v19, %s1012_s23 }
  0x49   : > { %494 = vrot.lane.b32.xlu1 %v478_v25, %s1014_s29 }
  0x4a   : > { %486 = vrot.lane.b32.xlu0 %v466_v28, %s1014_s29 }
  0x4d   : > { %496 = vrot.lane.b32.xlu1 %v481_v30, %s1014_s29 }
  0x4e   : > { %488 = vrot.lane.b32.xlu0 %v469_v31, %s1014_s29 }
  0x51   : > { %519 = vrot.lane.b32.xlu1 %v1169_v59, %s1015_s6 }
  0x52   : > { %511 = vrot.lane.b32.xlu0 %v1173_v61, %s1015_s6 }
  0x55   : > { %521 = vrot.lane.b32.xlu1 %v1123_v32, %s1015_s6 }
  0x56   : > { %513 = vrot.lane.b32.xlu0 %v1088_v10, %s1015_s6 }
  0x59   : > { %547 = vrot.lane.b32.xlu1 %v393_v7, %s1016_s21 }
  0x5a   : > { %539 = vrot.lane.b32.xlu0 %v381_v8, %s1016_s21 }
  0x5d   : > { %549 = vrot.lane.b32.xlu1 %v1131_v42, %s1016_s21 }
  0x5e   : > { %541 = vrot.lane.b32.xlu0 %v1105_v21, %s1016_s21 }
  0x83   : > { %v435_v33 = vpop.permute.xlu1 %434 }
  0x84   : > { %v427_v34 = vpop.permute.xlu0 %426 }
  0x87   : > { %v397_v35 = vpop.permute.xlu1 %396 }
  0x88   : > { %v395_v36 = vpop.permute.xlu0 %394  ;;  %v561_v6 = vsel %vm559_vm1, %v1073_v2, %v397_v35 }
  0x89   : > { %v560_v50 = vsel %vm559_vm1, %v1080_v5, %v395_v36 }
  0x8a   : > { %v569_v55 = vsel %vm568_vm2, %v560_v50, %v427_v34 }
  0x8b   : > { %v405_v37 = vpop.permute.xlu1 %404 }
  0x8c   : > { %v403_v38 = vpop.permute.xlu0 %402  ;;  %v565_v3 = vsel %vm559_vm1, %v1085_v9, %v405_v37 }
  0x8d   : > { %v564_v21 = vsel %vm559_vm1, %v1088_v10, %v403_v38 }
  0x8e   : > { %v573_v53 = vsel %vm568_vm2, %v564_v21, %v435_v33  ;;  %v892_v21 = vld [vmem:[%s1315_s3] ss:$0 sm:$0xff] }
  0x8f   : > { %v437_v32 = vpop.permute.xlu1 %436 }
  0x90   : > { %v429_v39 = vpop.permute.xlu0 %428  ;;  %v574_v7 = vsel %vm568_vm2, %v565_v3, %v437_v32 }
  0x91   : > { %v570_v8 = vsel %vm568_vm2, %v561_v6, %v429_v39 }
  0x93   : > { %v491_v40 = vpop.permute.xlu1 %490 }
  0x94   : > { %v483_v41 = vpop.permute.xlu0 %482  ;;  %v582_v54 = vsel %vm577_vm3, %v573_v53, %v491_v40 }
  0x95   : > { %v578_v56 = vsel %vm577_vm3, %v569_v55, %v483_v41 }
  0x97   : > { %v493_v43 = vpop.permute.xlu1 %492 }
  0x98   : > { %v485_v44 = vpop.permute.xlu0 %484  ;;  %v583_v11 = vsel %vm577_vm3, %v574_v7, %v493_v43 }
  0x99   : > { %v579_v12 = vsel %vm577_vm3, %v570_v8, %v485_v44 }
  0x9b   : > { %v516_v46 = vpop.permute.xlu1 %515 }
  0x9c   : > { %v508_v48 = vpop.permute.xlu0 %507  ;;  %v591_v10 = vsel %vm586_vm4, %v582_v54, %v516_v46 }
  0x9d   : > { %v587_v5 = vsel %vm586_vm4, %v578_v56, %v508_v48 }
  0x9f   : > { %v407_v49 = vpop.permute.xlu1 %406 }
  0xa0   : > { %v399_v42 = vpop.permute.xlu0 %398  ;;  %v566_v27 = vsel %vm559_vm1, %v1137_v45, %v407_v49 }
  0xa1   : > { %v562_v29 = vsel %vm559_vm1, %v1141_v47, %v399_v42 }
  0xa3   : > { %v518_v51 = vpop.permute.xlu1 %517 }
  0xa4   : > { %v510_v52 = vpop.permute.xlu0 %509  ;;  %v592_v13 = vsel %vm586_vm4, %v583_v11, %v518_v51 }
  0xa5   : > { %v588_v15 = vsel %vm586_vm4, %v579_v12, %v510_v52 }
  0xa7   : > { %v544_v57 = vpop.permute.xlu1 %543 }
  0xa8   : > { %v536_v58 = vpop.permute.xlu0 %535  ;;  %v600_v60 = vsel %vm595_vm5, %v591_v10, %v544_v57 }
  0xa9   : > { %v596_v62 = vsel %vm595_vm5, %v587_v5, %v536_v58  ;;  %938 = vmatprep.mubr.msk.f32.mxu1 %vm617_vm6, %v600_v60 }
  0xaa   : > { %932 = vmatprep.mubr.msk.f32.mxu0 %vm617_vm6, %v596_v62 }
  0xab   : > { %v409_v63 = vpop.permute.xlu1 %408 }
  0xac   : > { %v401_v0 = vpop.permute.xlu0 %400  ;;  %v567_v37 = vsel %vm559_vm1, %v1169_v59, %v409_v63 }
  0xad   : > { %v563_v47 = vsel %vm559_vm1, %v1173_v61, %v401_v0 }
  0xaf   : > { %v439_v1 = vpop.permute.xlu1 %438 }
  0xb0   : > { %v431_v4 = vpop.permute.xlu0 %430  ;;  %v575_v30 = vsel %vm568_vm2, %v566_v27, %v439_v1 }
  0xb1   : > { %v571_v31 = vsel %vm568_vm2, %v562_v29, %v431_v4 }
  0xb3   : > { %v546_v14 = vpop.permute.xlu1 %545 }
  0xb4   : > { %v601_v16 = vsel %vm595_vm5, %v592_v13, %v546_v14  ;;  %v538_v9 = vpop.permute.xlu0 %537 }
  0xb5   : > { %v597_v17 = vsel %vm595_vm5, %v588_v15, %v538_v9  ;;  %939 = vmatmul.mubr.msk.f32.vlgmr.msra.gmra.mxu1 %vm617_vm6, %v601_v16 }
  0xb6   : > { %933 = vmatmul.mubr.msk.f32.vlgmr.msra.gmra.mxu0 %vm617_vm6, %v597_v17 }
  0xb7   : > { %v441_v2 = vpop.permute.xlu1 %440 }
  0xb8   : > { %v433_v18 = vpop.permute.xlu0 %432  ;;  %v576_v39 = vsel %vm568_vm2, %v567_v37, %v441_v2 }
  0xb9   : > { %v572_v41 = vsel %vm568_vm2, %v563_v47, %v433_v18 }
  0xbb   : > { %v495_v19 = vpop.permute.xlu1 %494 }
  0xbc   : > { %v487_v20 = vpop.permute.xlu0 %486  ;;  %v584_v33 = vsel %vm577_vm3, %v575_v30, %v495_v19 }
  0xbd   : > { %v580_v34 = vsel %vm577_vm3, %v571_v31, %v487_v20 }
  0xbf   : > { %v497_v22 = vpop.permute.xlu1 %496 }
  0xc0   : > { %v489_v23 = vpop.permute.xlu0 %488  ;;  %v585_v43 = vsel %vm577_vm3, %v576_v39, %v497_v22 }
  0xc1   : > { %v581_v59 = vsel %vm577_vm3, %v572_v41, %v489_v23 }
  0xc3   : > { %v520_v24 = vpop.permute.xlu1 %519 }
  0xc4   : > { %v512_v25 = vpop.permute.xlu0 %511  ;;  %v593_v35 = vsel %vm586_vm4, %v584_v33, %v520_v24 }
  0xc5   : > { %v589_v45 = vsel %vm586_vm4, %v580_v34, %v512_v25 }
  0xc7   : > { %v522_v26 = vpop.permute.xlu1 %521 }
  0xc8   : > { %v514_v28 = vpop.permute.xlu0 %513  ;;  %v594_v44 = vsel %vm586_vm4, %v585_v43, %v522_v26 }
  0xc9   : > { %v590_v61 = vsel %vm586_vm4, %v581_v59, %v514_v28 }
  0xcb   : > { %v548_v36 = vpop.permute.xlu1 %547 }
  0xcc   : > { %v602_v38 = vsel %vm595_vm5, %v593_v35, %v548_v36  ;;  %v540_v32 = vpop.permute.xlu0 %539 }
  0xcd   : > { %v598_v40 = vsel %vm595_vm5, %v589_v45, %v540_v32  ;;  %941 = vmatprep.mubr.msk.f32.mxu1 %vm617_vm6, %v602_v38 }
  0xce   : > { %935 = vmatprep.mubr.msk.f32.mxu0 %vm617_vm6, %v598_v40 }
  0xcf   : > { %v550_v46 = vpop.permute.xlu1 %549 }
  0xd0   : > { %v603_v48 = vsel %vm595_vm5, %v594_v44, %v550_v46  ;;  %v542_v49 = vpop.permute.xlu0 %541 }
  0xd1   : > { %v599_v42 = vsel %vm595_vm5, %v590_v61, %v542_v49  ;;  %942 = vmatmul.mubr.msk.f32.gmra.mxu1 %vm617_vm6, %v603_v48 }
  0xd2   : > { %936 = vmatmul.mubr.msk.f32.gmra.mxu0 %vm617_vm6, %v599_v42 }
 0x175   : > { %v940_v50 = vpop.f32.mrf.mxu1 }
 0x176   : > { %v934_v51 = vpop.f32.mrf.mxu0  ;;  %v734_v52 = vadd.f32 %v940_v50, %v892_v21 }
 0x177   : > { %v714_v53 = vadd.f32 %v934_v51, %v892_v21  ;;  %v728_v54 = vpop.f32.mrf.mxu1 }
 0x178   : > { %753 = vst.msk [vmem:[%s316_s27 + $0x28] sm:$0xff] %vm747_vm7, %v734_v52  ;;  %v708_v55 = vpop.f32.mrf.mxu0  ;;  %v729_v56 = vadd.f32 %v892_v21, %v728_v54 }
 0x179   : > { %749 = vst.msk [vmem:[%s316_s27 + $0x8] sm:$0xff] %vm747_vm7, %v714_v53  ;;  %v709_v10 = vadd.f32 %v892_v21, %v708_v55 }
 0x17a   : > { %752 = vst.msk [vmem:[%s316_s27 + $0x20] sm:$0xff] %vm747_vm7, %v729_v56 }
 0x17b   : > { %748 = vst.msk [vmem:[%s316_s27] sm:$0xff] %vm747_vm7, %v709_v10 }
 0x191   : > { %v943_v57 = vpop.f32.mrf.mxu1 }
 0x192   : > { %v937_v5 = vpop.f32.mrf.mxu0  ;;  %v744_v58 = vadd.f32 %v943_v57, %v892_v21 }
 0x193   : > { %v724_v60 = vadd.f32 %v937_v5, %v892_v21  ;;  %v738_v62 = vpop.f32.mrf.mxu1 }
 0x194   : > { %755 = vst.msk [vmem:[%s316_s27 + $0x38] sm:$0xff] %vm747_vm7, %v744_v58  ;;  %v718_v63 = vpop.f32.mrf.mxu0  ;;  %v739_v0 = vadd.f32 %v892_v21, %v738_v62 }
 0x195   : > { %751 = vst.msk [vmem:[%s316_s27 + $0x18] sm:$0xff] %vm747_vm7, %v724_v60  ;;  %v719_v1 = vadd.f32 %v892_v21, %v718_v63 }
 0x196   : > { %754 = vst.msk [vmem:[%s316_s27 + $0x30] sm:$0xff] %vm747_vm7, %v739_v0 }
 0x197   : > { %750 = vst.msk [vmem:[%s316_s27 + $0x10] sm:$0xff] %vm747_vm7, %v719_v1 }
 0x198 PF: > { %s14_s17 = sadd.s32 1, %s1010_s17   ;;  %s1317_s15 = smov %s1006_s16 }
 0x199   : > { %p11_p5 = scmp.ge.s32.totalorder %s14_s17, 4   ;;  %s1318_s16 = smov %s1320_s18 }
 0x19b   :  { %13 = sbr.rel (!%p11_p5) target bundleno = 2 (0x2), region = 70 }

</bundles_post_ra>
